<compile_context>
chip_gen: v5e
topology: v5e:2x2
jax: 0.10.0
libtpu: 0.0.40
codegen_flags: <defaults>
</compile_context>

<pallas_src>
import jax
import jax.numpy as jnp
from jax.experimental import pallas as pl
from jax.experimental.pallas import tpu as pltpu

LANE = 128      # vreg lane width
SUBLANE = 8     # vreg sublane width


def _round_up(x, m):
    return ((x + m - 1) // m) * m


def actor_kernel(x_ref, w1_ref, b1_ref, w2_ref, b2_ref, w3_ref, b3_ref, o_ref):
    # All operands f32; MXU accumulates in f32.  Compute is fully hidden under DMA.
    x = x_ref[...]
    h1 = jnp.maximum(
        jnp.dot(x, w1_ref[...], preferred_element_type=jnp.float32) + b1_ref[...], 0.0)
    h2 = jnp.maximum(
        jnp.dot(h1, w2_ref[...], preferred_element_type=jnp.float32) + b2_ref[...], 0.0)
    out = jnp.dot(h2, w3_ref[...], preferred_element_type=jnp.float32) + b3_ref[...]
    o_ref[...] = out.astype(o_ref.dtype)


def _pick_batch_tile(batch, block_batch):
    """Balanced batch tiles, multiple of 8, with >=2 grid steps when batch allows (v7x)."""
    n_tiles = max(pl.cdiv(batch, block_batch),          # cap tile size
                  min(2, pl.cdiv(batch, SUBLANE)))      # >=2 steps for megacore if possible
    return _round_up(pl.cdiv(batch, n_tiles), SUBLANE)


def actor_forward(x, kparams, *, block_batch=1024):
    """x: (B, dim_states) float32. kparams: output of prepare_actor_params()."""
    w1, b1 = kparams["w1"], kparams["b1"]
    w2, b2 = kparams["w2"], kparams["b2"]
    w3, b3 = kparams["w3"], kparams["b3"]

    B, din = x.shape
    assert din == w1.shape[0], "dim_states mismatch"
    dact = w3.shape[1]

    tb = _pick_batch_tile(B, block_batch)
    grid = (pl.cdiv(B, tb),)   # ragged final block handled by Pallas (masked stores)

    resident = lambda a: pl.BlockSpec(a.shape, lambda i: (0, 0))  # weights stay in VMEM
    return pl.pallas_call(
        actor_kernel,
        out_shape=jax.ShapeDtypeStruct((B, dact), jnp.float32),
        grid=grid,
        in_specs=[
            pl.BlockSpec((tb, din), lambda i: (i, 0)),   # x streamed over batch tiles
            resident(w1), resident(b1),
            resident(w2), resident(b2),
            resident(w3), resident(b3),
        ],
        out_specs=pl.BlockSpec((tb, dact), lambda i: (i, 0)),
        compiler_params=pltpu.CompilerParams(
            dimension_semantics=("parallel",),  # megacore sharding on v7x; no-op on v5e/v6e
        ),
    )(x, w1, b1, w2, b2, w3, b3)


def init_actor_params(key, dim_states, dim_actions, hidden=64, continuous_control=False):
    """PyTorch nn.Linear default init (U(+-1/sqrt(fan_in))); weights stored as (in, out) = W.T."""
    ks = jax.random.split(key, 6)

    def lin(kw, kb, fan_in, fan_out):
        bound = 1.0 / (fan_in ** 0.5)
        w = jax.random.uniform(kw, (fan_in, fan_out), jnp.float32, -bound, bound)
        b = jax.random.uniform(kb, (1, fan_out), jnp.float32, -bound, bound)
        return w, b

    w1, b1 = lin(ks[0], ks[1], dim_states, hidden)
    w2, b2 = lin(ks[2], ks[3], hidden, hidden)
    w3, b3 = lin(ks[4], ks[5], hidden, dim_actions)
    p = {"w1": w1, "b1": b1, "w2": w2, "b2": b2, "w3": w3, "b3": b3,
         "dim_states": dim_states, "dim_actions": dim_actions}
    if continuous_control:
        # TODO(synk): log_std exists on the PyTorch module but is unused by forward().
        p["log_std"] = jnp.zeros((dim_actions,), jnp.float32)
    return p


def prepare_actor_params(params):
    """Zero-pad only the (VMEM-resident, free) hidden dim to 128 lanes; keep the input
    feature dim and the action head unpadded to avoid streamed-HBM traffic amplification.
    Weights stay float32 for exact PyTorch parity."""
    din, dact = params["dim_states"], params["dim_actions"]
    hid = params["w1"].shape[1]
    hid_p = _round_up(hid, LANE)

    def pad2(a, rows, cols):
        r, c = a.shape
        return jnp.pad(a, ((0, rows - r), (0, cols - c)))

    return {
        "w1": pad2(params["w1"], din, hid_p),     # (din, hid_p)  padded cols are zero
        "b1": pad2(params["b1"], 1, hid_p),       # padded bias entries zero -> relu(0)=0
        "w2": pad2(params["w2"], hid_p, hid_p),   # padded rows/cols zero
        "b2": pad2(params["b2"], 1, hid_p),
        "w3": pad2(params["w3"], hid_p, dact),    # padded rows zero -> no contribution
        "b3": params["b3"],
        "dim_states": din,
        "dim_actions": dact,
    }


def actor_reference(x, p):
    """Pure-JAX reference on the unpadded f32 params (PyTorch-equivalent forward)."""
    h1 = jnp.maximum(jnp.dot(x, p["w1"], preferred_element_type=jnp.float32) + p["b1"], 0.0)
    h2 = jnp.maximum(jnp.dot(h1, p["w2"], preferred_element_type=jnp.float32) + p["b2"], 0.0)
    return jnp.dot(h2, p["w3"], preferred_element_type=jnp.float32) + p["b3"]


if __name__ == "__main__":
    key = jax.random.PRNGKey(0)
    k_param, k_x = jax.random.split(key)

    batch, dim_states, dim_actions = 8, 32, 4
    raw_params = init_actor_params(k_param, dim_states, dim_actions, continuous_control=True)
    kparams = prepare_actor_params(raw_params)

    x = jax.random.normal(k_x, (batch, dim_states), jnp.float32)

    out = actor_forward(x, kparams)
    out = jax.block_until_ready(out)
    assert out.shape == (batch, dim_actions)

    # Check vs the f32 PyTorch-equivalent forward (zero-padding of the hidden dim is exact;
    # small tolerance only covers matmul accumulation-order / default-precision differences).
    ref = actor_reference(x, raw_params)
    assert jnp.allclose(out, ref, atol=2e-3, rtol=2e-3), "mismatch vs f32 reference"

    # Also exercise a ragged / multi-tile batch to hit the masked final block path.
    xb = jax.random.normal(k_x, (21, dim_states), jnp.float32)
    outb = jax.block_until_ready(actor_forward(xb, kparams, block_batch=16))
    refb = actor_reference(xb, raw_params)
    assert outb.shape == (21, dim_actions)
    assert jnp.allclose(outb, refb, atol=2e-3, rtol=2e-3), "mismatch on ragged batch"

    print("KERNEL_OK")
</pallas_src>

<mosaic_0001>
module attributes {stable_mosaic.version = 11 : i64} {
  func.func @actor_kernel(%arg0: i32, %arg1: memref<8x32xf32, #tpu.memory_space<vmem>>, %arg2: memref<32x128xf32, #tpu.memory_space<vmem>>, %arg3: memref<1x128xf32, #tpu.memory_space<vmem>>, %arg4: memref<128x128xf32, #tpu.memory_space<vmem>>, %arg5: memref<1x128xf32, #tpu.memory_space<vmem>>, %arg6: memref<128x4xf32, #tpu.memory_space<vmem>>, %arg7: memref<1x4xf32, #tpu.memory_space<vmem>>, %arg8: memref<8x4xf32, #tpu.memory_space<vmem>>) attributes {dimension_semantics = [#tpu.dimension_semantics<parallel>], iteration_bounds = array<i64: 1>, scalar_prefetch = 0 : i64, scratch_operands = 0 : i64, tpu.core_type = #tpu.core_type<tc>, window_params = [{transform_indices = @transform_0, window_bounds = array<i64: 8, 32>}, {pipeline_mode = #tpu.pipeline_mode<synchronous>, transform_indices = @transform_1, window_bounds = array<i64: 32, 128>}, {pipeline_mode = #tpu.pipeline_mode<synchronous>, transform_indices = @transform_2, window_bounds = array<i64: 1, 128>}, {pipeline_mode = #tpu.pipeline_mode<synchronous>, transform_indices = @transform_3, window_bounds = array<i64: 128, 128>}, {pipeline_mode = #tpu.pipeline_mode<synchronous>, transform_indices = @transform_4, window_bounds = array<i64: 1, 128>}, {pipeline_mode = #tpu.pipeline_mode<synchronous>, transform_indices = @transform_5, window_bounds = array<i64: 128, 4>}, {pipeline_mode = #tpu.pipeline_mode<synchronous>, transform_indices = @transform_6, window_bounds = array<i64: 1, 4>}, {transform_indices = @transform_7, window_bounds = array<i64: 8, 4>}]} {
    %c0 = arith.constant 0 : index
    %c0_0 = arith.constant 0 : index
    %0 = vector.load %arg1[%c0, %c0_0] : memref<8x32xf32, #tpu.memory_space<vmem>>, vector<8x32xf32>
    %c0_1 = arith.constant 0 : index
    %c0_2 = arith.constant 0 : index
    %1 = vector.load %arg2[%c0_1, %c0_2] : memref<32x128xf32, #tpu.memory_space<vmem>>, vector<32x128xf32>
    %cst = arith.constant dense<0.000000e+00> : vector<8x128xf32>
    %2 = tpu.matmul %0, %1, %cst {dimension_numbers = #tpu.dot_dimension_numbers<[1], [0], [0], [1], [0, 0, 1, 1], [], []>} : vector<8x32xf32>, vector<32x128xf32>, vector<8x128xf32> -> vector<8x128xf32>
    %c0_3 = arith.constant 0 : index
    %c0_4 = arith.constant 0 : index
    %3 = vector.load %arg3[%c0_3, %c0_4] : memref<1x128xf32, #tpu.memory_space<vmem>>, vector<1x128xf32>
    %4 = vector.broadcast %3 : vector<1x128xf32> to vector<8x128xf32>
    %5 = arith.addf %2, %4 : vector<8x128xf32>
    %cst_5 = arith.constant 0.000000e+00 : f32
    %6 = vector.broadcast %cst_5 : f32 to vector<8x128xf32>
    %7 = arith.maximumf %5, %6 : vector<8x128xf32>
    %c0_6 = arith.constant 0 : index
    %c0_7 = arith.constant 0 : index
    %8 = vector.load %arg4[%c0_6, %c0_7] : memref<128x128xf32, #tpu.memory_space<vmem>>, vector<128x128xf32>
    %cst_8 = arith.constant dense<0.000000e+00> : vector<8x128xf32>
    %9 = tpu.matmul %7, %8, %cst_8 {dimension_numbers = #tpu.dot_dimension_numbers<[1], [0], [0], [1], [0, 0, 1, 1], [], []>} : vector<8x128xf32>, vector<128x128xf32>, vector<8x128xf32> -> vector<8x128xf32>
    %c0_9 = arith.constant 0 : index
    %c0_10 = arith.constant 0 : index
    %10 = vector.load %arg5[%c0_9, %c0_10] : memref<1x128xf32, #tpu.memory_space<vmem>>, vector<1x128xf32>
    %11 = vector.broadcast %10 : vector<1x128xf32> to vector<8x128xf32>
    %12 = arith.addf %9, %11 : vector<8x128xf32>
    %cst_11 = arith.constant 0.000000e+00 : f32
    %13 = vector.broadcast %cst_11 : f32 to vector<8x128xf32>
    %14 = arith.maximumf %12, %13 : vector<8x128xf32>
    %c0_12 = arith.constant 0 : index
    %c0_13 = arith.constant 0 : index
    %15 = vector.load %arg6[%c0_12, %c0_13] : memref<128x4xf32, #tpu.memory_space<vmem>>, vector<128x4xf32>
    %cst_14 = arith.constant dense<0.000000e+00> : vector<8x4xf32>
    %16 = tpu.matmul %14, %15, %cst_14 {dimension_numbers = #tpu.dot_dimension_numbers<[1], [0], [0], [1], [0, 0, 1, 1], [], []>} : vector<8x128xf32>, vector<128x4xf32>, vector<8x4xf32> -> vector<8x4xf32>
    %c0_15 = arith.constant 0 : index
    %c0_16 = arith.constant 0 : index
    %17 = vector.load %arg7[%c0_15, %c0_16] : memref<1x4xf32, #tpu.memory_space<vmem>>, vector<1x4xf32>
    %18 = vector.broadcast %17 : vector<1x4xf32> to vector<8x4xf32>
    %19 = arith.addf %16, %18 : vector<8x4xf32>
    %c0_17 = arith.constant 0 : index
    %c0_18 = arith.constant 0 : index
    %20 = vector.load %arg8[%c0_17, %c0_18] : memref<8x4xf32, #tpu.memory_space<vmem>>, vector<8x4xf32>
    tpu.vector_store %arg8[%c0_17, %c0_18], %19 {strides = array<i32>} : memref<8x4xf32, #tpu.memory_space<vmem>>, vector<8x4xf32>,
    return
  }
  func.func @transform_0(%arg0: i32) -> (i32, i32) {
    %c0_i32 = arith.constant 0 : i32
    %c0_i32_0 = arith.constant 0 : i32
    return %arg0, %c0_i32 : i32, i32
  }
  func.func @transform_1(%arg0: i32) -> (i32, i32) {
    %c0_i32 = arith.constant 0 : i32
    %c0_i32_0 = arith.constant 0 : i32
    %c0_i32_1 = arith.constant 0 : i32
    return %c0_i32, %c0_i32_0 : i32, i32
  }
  func.func @transform_2(%arg0: i32) -> (i32, i32) {
    %c0_i32 = arith.constant 0 : i32
    %c0_i32_0 = arith.constant 0 : i32
    %c0_i32_1 = arith.constant 0 : i32
    return %c0_i32, %c0_i32_0 : i32, i32
  }
  func.func @transform_3(%arg0: i32) -> (i32, i32) {
    %c0_i32 = arith.constant 0 : i32
    %c0_i32_0 = arith.constant 0 : i32
    %c0_i32_1 = arith.constant 0 : i32
    return %c0_i32, %c0_i32_0 : i32, i32
  }
  func.func @transform_4(%arg0: i32) -> (i32, i32) {
    %c0_i32 = arith.constant 0 : i32
    %c0_i32_0 = arith.constant 0 : i32
    %c0_i32_1 = arith.constant 0 : i32
    return %c0_i32, %c0_i32_0 : i32, i32
  }
  func.func @transform_5(%arg0: i32) -> (i32, i32) {
    %c0_i32 = arith.constant 0 : i32
    %c0_i32_0 = arith.constant 0 : i32
    %c0_i32_1 = arith.constant 0 : i32
    return %c0_i32, %c0_i32_0 : i32, i32
  }
  func.func @transform_6(%arg0: i32) -> (i32, i32) {
    %c0_i32 = arith.constant 0 : i32
    %c0_i32_0 = arith.constant 0 : i32
    %c0_i32_1 = arith.constant 0 : i32
    return %c0_i32, %c0_i32_0 : i32, i32
  }
  func.func @transform_7(%arg0: i32) -> (i32, i32) {
    %c0_i32 = arith.constant 0 : i32
    %c0_i32_0 = arith.constant 0 : i32
    return %arg0, %c0_i32 : i32, i32
  }
}

</mosaic_0001>

<bundles_post_ra>
// kernel: tpu_custom_call.1
= control target key start
LH: loop header
LB: loop body
LE: loop exit
PB: predicated region body
PF: predicated region fallthrough
CT: control target
= control target key end

     0   :  { %12 = vsyncpa [#allocation3], 0  ;;  %s397_s0 = inlined_call_operand.hbm [shape: f32[8,32], index: 0, kind: input, shape index: {}]   ;;  %s398_s1 = inlined_call_operand.hbm [shape: f32[32,128], index: 1, kind: input, shape index: {}]   ;;  %s399_s2 = inlined_call_operand.vmem [shape: f32[1,128], index: 2, kind: input, shape index: {}]   ;;  %s400_s3 = inlined_call_operand.vmem [shape: f32[128,128], index: 3, kind: input, shape index: {}]   ;;  %s401_s4 = inlined_call_operand.vmem [shape: f32[1,128], index: 4, kind: input, shape index: {}]   ;;  %s402_s5 = inlined_call_operand.vmem [shape: f32[128,4], index: 5, kind: input, shape index: {}]   ;;  %s403_s6 = inlined_call_operand.vmem [shape: f32[1,4], index: 6, kind: input, shape index: {}]   ;;  %s404_s7 = inlined_call_operand.vmem [shape: f32[8,4], index: 7, kind: output, shape index: {}]  }
   0x1   :  { %s19_s26 = sshll.u32 %s397_s0, 4  ;;  %s20_s26 = int_to_ptr.hbm [resolvable:$true] %s19_s26 }
   0x2   :  { %13 = vsyncpa [#allocation5], 0  ;;  %s239_s27 = smov [#allocation2]   ;;  %s29_s8 = sshll.u32 %s398_s1, 4  ;;  %s30_s8 = int_to_ptr.hbm [resolvable:$true] %s29_s8 }
   0x3   :  { %s21_s28 = sshll.u32 %s239_s27, 4  ;;  %s240_s9 = smov [#allocation4]   ;;  %s22_s28 = int_to_ptr.vmem [resolvable:$true] %s21_s28 }
   0x4   :  { %24 = dma.hbm_to_vmem [thread:$0]  %s20_s26, 128, %s22_s28, [#allocation3]  }
   0x5   :  { %s31_s10 = sshll.u32 %s240_s9, 4  ;;  %s241_s11 = smov 128   ;;  %s32_s10 = int_to_ptr.vmem [resolvable:$true] %s31_s10 }
   0x6   :  { %s242_s12 = smov 8  }
   0x7   :  { %37 = dma.hbm_to_vmem [thread:$0]  %s30_s8, 512, %s32_s10, [#allocation5], %s241_s11, %s241_s11, %s242_s12  }
   0x8   :  { %235 = dma.done.wait [#allocation3], 128  }
   0x9   :  { %236 = vsyncadd [#allocation3], 4294967168 }
   0xa   :  { %237 = dma.done.wait [#allocation5], 512  }
   0xb   :  { %238 = vsyncadd [#allocation5], 4294966784  ;;  %v60_v0 = vld [vmem:[#allocation4 + $0x18] sm:$0xff]  ;;  %v59_v1 = vld [vmem:[#allocation4 + $0x10] sm:$0xff]  ;;  %vm65_vm0 = vcmask 261120   ;;  %vm171_vm1 = vcmask 31744  }
   0xc   :  { %81 = vmatpush.msra.mxu0 %v60_v0  ;;  %v105_v2 = vld [vmem:[%s400_s3 + $0x78] sm:$0xff]  ;;  %v58_v3 = vld [vmem:[#allocation4 + $0x8] sm:$0xff]  ;;  %v103_v5 = vld [vmem:[%s400_s3 + $0x68] sm:$0xff] }
   0xd   :  { %110 = vmatpush.msra.mxu1 %v105_v2  ;;  %v104_v4 = vld [vmem:[%s400_s3 + $0x70] sm:$0xff]  ;;  %v57_v6 = vld [vmem:[#allocation4] sm:$0xff]  ;;  %v56_v7 = vld [vmem:[#allocation2] sm:$0xff] }
   0xe   :  { %82 = vmatpush.msra.mxu0 %v59_v1  ;;  %v102_v8 = vld [vmem:[%s400_s3 + $0x60] sm:$0xff]  ;;  %v101_v9 = vld [vmem:[%s400_s3 + $0x58] sm:$0xff]  ;;  %v100_v10 = vld [vmem:[%s400_s3 + $0x50] sm:$0xff] }
   0xf   :  { %111 = vmatpush.msra.mxu1 %v104_v4  ;;  %v99_v11 = vld [vmem:[%s400_s3 + $0x48] sm:$0xff]  ;;  %v98_v12 = vld [vmem:[%s400_s3 + $0x40] sm:$0xff]  ;;  %v97_v13 = vld [vmem:[%s400_s3 + $0x38] sm:$0xff] }
  0x10   :  { %83 = vmatpush.msra.mxu0 %v58_v3  ;;  %v96_v14 = vld [vmem:[%s400_s3 + $0x30] sm:$0xff]  ;;  %v95_v15 = vld [vmem:[%s400_s3 + $0x28] sm:$0xff]  ;;  %v94_v16 = vld [vmem:[%s400_s3 + $0x20] sm:$0xff] }
  0x11   :  { %112 = vmatpush.msra.mxu1 %v103_v5  ;;  %v93_v17 = vld [vmem:[%s400_s3 + $0x18] sm:$0xff]  ;;  %v92_v18 = vld [vmem:[%s400_s3 + $0x10] sm:$0xff]  ;;  %v91_v19 = vld [vmem:[%s400_s3 + $0x8] sm:$0xff] }
  0x12   :  { %84 = vmatpush.msra.mxu0 %v57_v6  ;;  %v90_v20 = vld [vmem:[%s400_s3] sm:$0xff]  ;;  %v146_v21 = vld [vmem:[%s402_s5 + $0x78] sm:$0xff]  ;;  %v145_v22 = vld [vmem:[%s402_s5 + $0x70] sm:$0xff] }
  0x13   :  { %179 = vmatmul.msk.f32.vlgmr.msra.gmra.mxu0 %vm65_vm0, %v56_v7  ;;  %113 = vmatpush.msra.mxu1 %v102_v8  ;;  %v144_v23 = vld [vmem:[%s402_s5 + $0x68] sm:$0xff]  ;;  %v143_v24 = vld [vmem:[%s402_s5 + $0x60] sm:$0xff]  ;;  %v142_v25 = vld [vmem:[%s402_s5 + $0x58] sm:$0xff] }
  0x14   :  { %151 = vmatpush.msra.mxu2 %v146_v21  ;;  %v141_v26 = vld [vmem:[%s402_s5 + $0x50] sm:$0xff]  ;;  %v140_v27 = vld [vmem:[%s402_s5 + $0x48] sm:$0xff]  ;;  %v139_v28 = vld [vmem:[%s402_s5 + $0x40] sm:$0xff] }
  0x15   :  { %114 = vmatpush.msra.mxu1 %v101_v9  ;;  %v138_v29 = vld [vmem:[%s402_s5 + $0x38] sm:$0xff]  ;;  %v137_v30 = vld [vmem:[%s402_s5 + $0x30] sm:$0xff]  ;;  %v136_v31 = vld [vmem:[%s402_s5 + $0x28] sm:$0xff] }
  0x16   :  { %152 = vmatpush.msra.mxu2 %v145_v22  ;;  %v135_v32 = vld [vmem:[%s402_s5 + $0x20] sm:$0xff]  ;;  %v134_v33 = vld [vmem:[%s402_s5 + $0x18] sm:$0xff]  ;;  %v133_v38 = vld [vmem:[%s402_s5 + $0x10] sm:$0xff] }
  0x17   :  { %115 = vmatpush.msra.mxu1 %v100_v10  ;;  %v184_v34 = vld [vmem:[%s399_s2] ss:$0 sm:$0xff]  ;;  %v132_v39 = vld [vmem:[%s402_s5 + $0x8] sm:$0xff] }
  0x18   :  { %153 = vmatpush.msra.mxu2 %v144_v23  ;;  %v131_v40 = vld [vmem:[%s402_s5] sm:$0xff] }
  0x19   :  { %116 = vmatpush.msra.mxu1 %v99_v11  ;;  %v185_v41 = vld [vmem:[%s401_s4] ss:$0 sm:$0xff] }
  0x1a   :  { %154 = vmatpush.msra.mxu2 %v143_v24  ;;  %v186_v45 = vld [vmem:[%s403_s6] ss:$0 sm:$0xff] }
  0x1b   :  { %117 = vmatpush.msra.mxu1 %v98_v12 }
  0x1c   :  { %155 = vmatpush.msra.mxu2 %v142_v25 }
  0x1d   :  { %118 = vmatpush.msra.mxu1 %v97_v13 }
  0x1e   :  { %156 = vmatpush.msra.mxu2 %v141_v26 }
  0x1f   :  { %119 = vmatpush.msra.mxu1 %v96_v14 }
  0x20   :  { %157 = vmatpush.msra.mxu2 %v140_v27 }
  0x21   :  { %120 = vmatpush.msra.mxu1 %v95_v15 }
  0x22   :  { %158 = vmatpush.msra.mxu2 %v139_v28 }
  0x23   :  { %121 = vmatpush.msra.mxu1 %v94_v16 }
  0x24   :  { %159 = vmatpush.msra.mxu2 %v138_v29 }
  0x25   :  { %122 = vmatpush.msra.mxu1 %v93_v17 }
  0x26   :  { %160 = vmatpush.msra.mxu2 %v137_v30 }
  0x27   :  { %123 = vmatpush.msra.mxu1 %v92_v18 }
  0x28   :  { %161 = vmatpush.msra.mxu2 %v136_v31 }
  0x29   :  { %124 = vmatpush.msra.mxu1 %v91_v19 }
  0x2a   :  { %162 = vmatpush.msra.mxu2 %v135_v32 }
  0x2b   :  { %125 = vmatpush.msra.mxu1 %v90_v20 }
  0x2c   :  { %163 = vmatpush.msra.mxu2 %v134_v33 }
  0x2e   :  { %164 = vmatpush.msra.mxu2 %v133_v38 }
  0x30   :  { %165 = vmatpush.msra.mxu2 %v132_v39 }
  0x32   :  { %166 = vmatpush.msra.mxu2 %v131_v40 }
  0x90   :  { %v86_v35 = vpop.f32.mrf.mxu0 }
  0x91   :  { %v87_v36 = vadd.f32 %v184_v34, %v86_v35 }
  0x93   :  { %v89_v37 = vmax.f32 %v87_v36, 0.0 }
  0x95   :  { %126 = vmatmul.f32.vlgmr.msra.gmra.mxu1 %v89_v37 }
 0x112   :  { %v127_v42 = vpop.f32.mrf.mxu1 }
 0x113   :  { %v128_v43 = vadd.f32 %v185_v41, %v127_v42 }
 0x115   :  { %v130_v44 = vmax.f32 %v128_v43, 0.0 }
 0x117   :  { %167 = vmatmul.f32.vlgmr.msra.gmra.mxu2 %v130_v44 }
 0x19a   :  { %v168_v46 = vpop.f32.mrf.mxu2 }
 0x19b   :  { %v169_v47 = vadd.f32 %v186_v45, %v168_v46 }
 0x19d   :  { %172 = vst.msk [vmem:[%s404_s7] sm:$0xff] %vm171_vm1, %v169_v47 }
 0x19e   :  { %177 = vsyncpa [#allocation3], 1 }
 0x19f   :  { %178 = vsyncpa [#allocation5], 1 }

</bundles_post_ra>
